<compile_context>
chip_gen: v5e
topology: v5e:2x2
jax: 0.10.0
libtpu: 0.0.40
codegen_flags: <defaults>
</compile_context>

<pallas_src>
import math

import jax
import jax.numpy as jnp
from jax.experimental import pallas as pl
from jax.experimental.pallas import tpu as pltpu

_SUBLANE = 8


def _round_up(x, m):
    return -(-x // m) * m


def _choose_seq_tile(S, D, itemsize, *, max_ts=1024, vmem_budget_bytes=24 << 20,
                     split_threshold=256):
    """Pick the sequence-tile height TS.

    Residency per seq row is ~6 tile-row copies (2x in + 2x out double buffers + PE
    stream/scratch), so TS is derived from D/dtype instead of a fixed 512 (which would
    blow v5e's 16 MiB default scoped-VMEM at large D).  TS is a multiple of 8 (sublane
    constraint) unless it equals the full S.  When the whole sequence would fit in one
    tile but S is large, split into 2 tiles so the "parallel" seq axis has >=2 steps and
    v7x's second TensorCore gets work (harmless ~0.35us extra step on single-TC chips).
    """
    bytes_per_row = 6 * D * itemsize
    ts = max(_SUBLANE, min(max_ts, vmem_budget_bytes // bytes_per_row))
    ts = (ts // _SUBLANE) * _SUBLANE
    if ts >= S:
        if S >= split_threshold:
            ts = _round_up(-(-S // 2), _SUBLANE)
        else:
            ts = S
    return ts


def _pe_add_streamed_kernel(x_ref, pe_ref, o_ref):
    # x_ref / pe_ref / o_ref: (1, TS, D) blocks, all in x.dtype -> shape- and dtype-identical add.
    o_ref[...] = x_ref[...] + pe_ref[...]


def _pe_add_inkernel_kernel(x_ref, aux_ref, o_ref, pe_ref):
    # x_ref / o_ref: (1, TS, D) blocks of input/output
    # aux_ref:       (2, D) f32; row 0 = per-column inverse frequency, row 1 = odd-column mask
    # pe_ref:        (1, TS, D) VMEM scratch in x.dtype; persists across grid steps
    _, TS, D = pe_ref.shape
    s_idx = pl.program_id(0)
    b_idx = pl.program_id(1)

    # Recompute the PE tile only when the sequence tile changes (batch index 0); all other
    # batch steps reuse the cached table.
    # CORRECTNESS INVARIANT: the batch grid axis must stay innermost and "arbitrary"
    # (sequential, restarting at 0 for each seq tile); reordering the grid breaks this gate.
    @pl.when(b_idx == 0)
    def _():
        row = jax.lax.broadcasted_iota(jnp.float32, (1, TS, 1), 1)
        pos = row + (s_idx * TS).astype(jnp.float32)       # absolute positions of this tile
        inv_freq = aux_ref[0:1, :]                          # (1, D), broadcasts over rows
        odd = aux_ref[1:2, :] > 0.5                         # (1, D) bool
        angle = pos * inv_freq                              # (1, TS, D); same values as reference
        # Exact sin/cos (no phase-shift trick) to match the reference table bit-for-bit-ish
        # even for large angles; cost is once per tile, amortized over all B batch steps.
        pe_ref[...] = jnp.where(odd, jnp.cos(angle), jnp.sin(angle)).astype(pe_ref.dtype)

    # Steady state: no cast, no reshape.
    o_ref[...] = x_ref[...] + pe_ref[...]


def _pe_table(S, D, dtype):
    """(1, S, D) sinusoidal table, mirroring the PyTorch buffer construction exactly."""
    position = jnp.arange(S, dtype=jnp.float32)[:, None]
    div_term = jnp.exp(jnp.arange(0, D, 2, dtype=jnp.float32) * (-math.log(10000.0) / D))
    pe = jnp.zeros((S, D), jnp.float32)
    pe = pe.at[:, 0::2].set(jnp.sin(position * div_term))
    pe = pe.at[:, 1::2].set(jnp.cos(position * div_term))
    return pe[None].astype(dtype)


def positional_encoding_add(x, *, small_batch_threshold=4):
    """x: (B, S, D) -> x + sinusoidal positional encoding, via a Pallas TPU kernel."""
    B, S, D = x.shape
    itemsize = jnp.dtype(x.dtype).itemsize
    TS = _choose_seq_tile(S, D, itemsize)
    num_s_tiles = pl.cdiv(S, TS)

    x_spec = pl.BlockSpec((1, TS, D), lambda s, b: (b, s, 0))
    out_spec = pl.BlockSpec((1, TS, D), lambda s, b: (b, s, 0))
    out_shape = jax.ShapeDtypeStruct((B, S, D), x.dtype)
    vmem_limit = 32 << 20  # above the ~24 MiB tile budget, under physical VMEM on all gens

    if B <= small_batch_threshold:
        # Small batch: stream a precomputed PE table (batch-invariant block, DMA'd once per
        # seq tile). Zero in-kernel transcendentals.
        pe = _pe_table(S, D, x.dtype)
        cost = pl.CostEstimate(
            flops=B * S * D,
            transcendentals=0,
            bytes_accessed=(2 * B * S * D + S * D) * itemsize,
        )
        return pl.pallas_call(
            _pe_add_streamed_kernel,
            out_shape=out_shape,
            grid_spec=pltpu.PrefetchScalarGridSpec(
                num_scalar_prefetch=0,
                grid=(num_s_tiles, B),
                in_specs=[x_spec,
                          pl.BlockSpec((1, TS, D), lambda s, b: (0, s, 0))],
                out_specs=out_spec,
            ),
            compiler_params=pltpu.CompilerParams(
                dimension_semantics=("parallel", "parallel"),  # fully independent blocks
                vmem_limit_bytes=vmem_limit,
            ),
            input_output_aliases={0: 0},   # out reuses x's buffer when donated
            cost_estimate=cost,
        )(x, pe)

    # Large batch: in-kernel cached PE scratch, reused across the (innermost) batch axis.
    col = jnp.arange(D, dtype=jnp.float32)
    inv_freq = jnp.exp((col - (col % 2.0)) * (-math.log(10000.0) / D))   # pair frequency per col
    odd_mask = (jnp.arange(D) % 2).astype(jnp.float32)
    aux = jnp.stack([inv_freq, odd_mask], axis=0)                        # (2, D) f32

    cost = pl.CostEstimate(
        flops=B * S * D,
        transcendentals=2 * num_s_tiles * TS * D,   # one sin + one cos per PE tile element
        bytes_accessed=2 * B * S * D * itemsize + 2 * D * 4,
    )
    return pl.pallas_call(
        _pe_add_inkernel_kernel,
        out_shape=out_shape,
        grid_spec=pltpu.PrefetchScalarGridSpec(
            num_scalar_prefetch=0,
            grid=(num_s_tiles, B),                  # batch innermost -> PE scratch reused
            in_specs=[x_spec,
                      pl.BlockSpec((2, D), lambda s, b: (0, 0))],
            out_specs=out_spec,
            scratch_shapes=[pltpu.VMEM((1, TS, D), x.dtype)],
        ),
        compiler_params=pltpu.CompilerParams(
            # batch MUST stay innermost / "arbitrary": the pl.when(b==0) PE cache relies on it
            dimension_semantics=("parallel", "arbitrary"),
            vmem_limit_bytes=vmem_limit,
        ),
        input_output_aliases={0: 0},
        cost_estimate=cost,
    )(x, aux)


def _reference_pe_add(x, max_len=5000):
    """Pure-JAX reference mirroring the PyTorch module exactly."""
    B, S, D = x.shape
    position = jnp.arange(0, max_len, dtype=jnp.float32)[:, None]
    div_term = jnp.exp(jnp.arange(0, D, 2, dtype=jnp.float32) * (-math.log(10000.0) / D))
    pe = jnp.zeros((max_len, D), jnp.float32)
    pe = pe.at[:, 0::2].set(jnp.sin(position * div_term))
    pe = pe.at[:, 1::2].set(jnp.cos(position * div_term))
    return x + pe[None, :S, :].astype(x.dtype)


if __name__ == "__main__":
    key = jax.random.PRNGKey(0)
    k1, k2 = jax.random.split(key)

    # Path 1: small batch -> streamed precomputed PE table (spec-sized shapes).
    B, S, D = 2, 8, 32
    x = jax.random.normal(k1, (B, S, D), dtype=jnp.float32)
    out = jax.block_until_ready(positional_encoding_add(x))
    ref = _reference_pe_add(x)
    assert out.shape == (B, S, D)
    assert jnp.allclose(out, ref, atol=1e-5, rtol=1e-5), "streamed path mismatch vs reference"

    # Path 2: larger batch -> in-kernel cached PE scratch, lane-dense D.
    B2, S2, D2 = 8, 64, 128
    x2 = jax.random.normal(k2, (B2, S2, D2), dtype=jnp.float32)
    out2 = jax.block_until_ready(positional_encoding_add(x2))
    ref2 = _reference_pe_add(x2)
    assert out2.shape == (B2, S2, D2)
    assert jnp.allclose(out2, ref2, atol=1e-5, rtol=1e-5), "in-kernel path mismatch vs reference"

    print("KERNEL_OK")
</pallas_src>

<mosaic_0001>
module attributes {stable_mosaic.version = 11 : i64} {
  func.func @_pe_add_streamed_kernel(%arg0: i32, %arg1: i32, %arg2: memref<1x8x32xf32, #tpu.memory_space<vmem>>, %arg3: memref<1x8x32xf32, #tpu.memory_space<vmem>>, %arg4: memref<1x8x32xf32, #tpu.memory_space<vmem>>) attributes {dimension_semantics = [#tpu.dimension_semantics<parallel>, #tpu.dimension_semantics<parallel>], iteration_bounds = array<i64: 1, 2>, scalar_prefetch = 0 : i64, scratch_operands = 0 : i64, tpu.core_type = #tpu.core_type<tc>, window_params = [{transform_indices = @transform_0, window_bounds = array<i64: 1, 8, 32>}, {transform_indices = @transform_1, window_bounds = array<i64: 1, 8, 32>}, {transform_indices = @transform_2, window_bounds = array<i64: 1, 8, 32>}]} {
    %c0 = arith.constant 0 : index
    %c0_0 = arith.constant 0 : index
    %c0_1 = arith.constant 0 : index
    %0 = vector.load %arg2[%c0, %c0_0, %c0_1] : memref<1x8x32xf32, #tpu.memory_space<vmem>>, vector<1x8x32xf32>
    %c0_2 = arith.constant 0 : index
    %c0_3 = arith.constant 0 : index
    %c0_4 = arith.constant 0 : index
    %1 = vector.load %arg3[%c0_2, %c0_3, %c0_4] : memref<1x8x32xf32, #tpu.memory_space<vmem>>, vector<1x8x32xf32>
    %2 = arith.addf %0, %1 : vector<1x8x32xf32>
    %c0_5 = arith.constant 0 : index
    %c0_6 = arith.constant 0 : index
    %c0_7 = arith.constant 0 : index
    %3 = vector.load %arg4[%c0_5, %c0_6, %c0_7] : memref<1x8x32xf32, #tpu.memory_space<vmem>>, vector<1x8x32xf32>
    tpu.vector_store %arg4[%c0_5, %c0_6, %c0_7], %2 {strides = array<i32>} : memref<1x8x32xf32, #tpu.memory_space<vmem>>, vector<1x8x32xf32>,
    return
  }
  func.func @transform_0(%arg0: i32, %arg1: i32) -> (i32, i32, i32) {
    %c0_i32 = arith.constant 0 : i32
    %c0_i32_0 = arith.constant 0 : i32
    return %arg1, %arg0, %c0_i32 : i32, i32, i32
  }
  func.func @transform_1(%arg0: i32, %arg1: i32) -> (i32, i32, i32) {
    %c0_i32 = arith.constant 0 : i32
    %c0_i32_0 = arith.constant 0 : i32
    %c0_i32_1 = arith.constant 0 : i32
    return %c0_i32, %arg0, %c0_i32_0 : i32, i32, i32
  }
  func.func @transform_2(%arg0: i32, %arg1: i32) -> (i32, i32, i32) {
    %c0_i32 = arith.constant 0 : i32
    %c0_i32_0 = arith.constant 0 : i32
    return %arg1, %arg0, %c0_i32 : i32, i32, i32
  }
}

</mosaic_0001>

<bundles_post_ra>
// kernel: tpu_custom_call.1
= control target key start
LH: loop header
LB: loop body
LE: loop exit
PB: predicated region body
PF: predicated region fallthrough
CT: control target
= control target key end

     0   :  { %7 = vsyncpa [#allocation3], 0  ;;  %s640_s0 = inlined_call_operand.hbm [shape: f32[2,8,32], index: 0, kind: input, shape index: {}, may-alias: {0,2}]   ;;  %s641_s1 = inlined_call_operand.vmem [shape: f32[1,8,32], index: 1, kind: input, shape index: {}]   ;;  %s642_s2 = inlined_call_operand.hbm [shape: f32[2,8,32], index: 2, kind: output, shape index: {}, may-alias: {0,2}]  }
   0x1   :  { %9 = vsyncpa [#allocation3 + $0x1], 0 }
   0x2   :  { %10 = vsyncpa [#allocation4], 0 }
   0x3   :  { %12 = vsyncpa [#allocation4 + $0x1], 0  ;;  %s517_s9 = smov 0   ;;  %s519_s10 = smov 0  }
   0x4   :  { %s521_s11 = smov 0   ;;  %s523_s12 = smov 0  }
   0x5   :  { %s525_s13 = smov 0   ;;  %s527_s14 = smov 0  }
   0x6 LB: > { %s312_s15 = sadd.s32 4294967295, %s500_s14   ;;  %s313_s16 = sadd.s32 4294967294, %s500_s14   ;;  %s500_s14 = sphi %s527_s14, %s18_s14   ;;  %s496_s13 = sphi %s525_s13, %s651_s13   ;;  %s492_s12 = sphi %s523_s12, %s650_s12   ;;  %s488_s11 = sphi %s521_s11, %s649_s11   ;;  %s484_s10 = sphi %s519_s10, %s648_s10   ;;  %s480_s9 = sphi %s517_s9, %s647_s9  }
   0x7   : > { %s27_s17 = sadd.s32 1, %s496_s13  ;;  %s39_s18 = sadd.s32 1, %s488_s11 }
   0x8   : > { %p28_p0 = scmp.ge.s32.totalorder %s27_s17, 2  ;;  %p46_p1 = scmp.ne.s32.totalorder %s488_s11, %s484_s10 }
   0x9   : > { %p47_p2 = scmp.eq.s32.totalorder %s500_s14, 0  ;;  %p52_p3 = scmp.ne.s32.totalorder %s484_s10, %s480_s9 }
   0xa   : > { %s653_s17 = smov (%p28_p0, %s27_s17), 0  ;;  %p53_p5 = scmp.eq.s32.totalorder %s312_s15, 0 }
   0xb   : > { %p558_p4 = por %p47_p2, %p46_p1  ;;  %s34_s20 = ssub.s32 %s496_s13, %s653_s17 }
   0xc   : > { %p104_p6 = scmp.eq.s32.totalorder %s312_s15, 1  ;;  %p37_p7 = scmp.eq.s32.totalorder %s34_s20, 0 }
   0xd   : > { %p564_p8 = por %p53_p5, %p52_p3  ;;  %p110_p10 = scmp.eq.s32.totalorder %s313_s16, 1 }
   0xe   : > { %p568_p9 = por %p104_p6, %p46_p1  ;;  %p316_p12 = scmp.ge.s32.totalorder %s500_s14, 2 }
   0xf   : > { %s573_s23 = scalar_select %p37_p7, %s488_s11, %s39_s18  }
  0x10   : > { %p575_p11 = por %p110_p10, %p52_p3  ;;  %p338_p13 = scmp.lt.s32.totalorder %s500_s14, 2 }
  0x11   : > { %s137_s25 = sand.u32 1, %s488_s11   ;;  %s318_s27 = sshll.u32 %s496_s13, 3 }
  0x12   : > { %s317_s26 = sshll.u32 %s137_s25, 3  ;;  %s146_s30 = scalar_lea.hbm %s640_s0, %s318_s27 }
  0x13   : > { %s141_s3 = scalar_lea.vmem [#allocation2], %s317_s26  ;;  %s148_s5 = sshll.u32 %s146_s30, 4  ;;  %s149_s5 = int_to_ptr.hbm [resolvable:$true] %s148_s5 }
  0x14   : > { %s150_s4 = sshll.u32 %s141_s3, 4  ;;  %p331_p0 = pnand %p338_p13, %p558_p4  ;;  %s151_s4 = int_to_ptr.vmem [resolvable:$true] %s150_s4 }
  0x15   : > { %p319_p1 = scmp.ge.s32.totalorder %s500_s14, 1  ;;  %p155_p2 = scmp.lt.s32.totalorder %s500_s14, 3 }
  0x16   : > { %s138_s6 = scalar_lea.sflag [#allocation3], %s137_s25 }
  0x17   : > { %333 = dma.hbm_to_vmem [thread:$0]  (!%p331_p0), %s149_s5, 128, %s151_s4, %s138_s6  }
  0x18   : > { %p156_p3 = pnand %p319_p1, %p155_p2 }
  0x19   : > { %s591_s7 = sand.u32 (!%p156_p3), 1, %s484_s10  }
  0x1a   : > { %159 = sbr.rel (%p156_p3) target bundleno = 47 (0x2f), region = 28  ;;  %s320_s8 = sshll.u32 (!%p156_p3), %s591_s7, 3 }
  0x1b   : > { %s162_s15 = scalar_lea.sflag (!%p156_p3), [#allocation3], %s591_s7  ;;  %s165_s16 = scalar_lea.vmem (!%p156_p3), [#allocation2], %s320_s8 }
  0x1f   : > { %471 = dma.done.wait (%p564_p8), %s162_s15, 128  }
  0x20   : > { %473 = vsyncadd (%p564_p8), %s162_s15, 4294967168  ;;  %s323_s18 = sshll.u32 %s492_s12, 3  ;;  %s190_s26 = scalar_lea.vmem [#allocation5], %s320_s8  ;;  %v195_v0 = vld [vmem:[%s165_s16] sm:$0xff]  ;;  %vm198_vm0 = vcmask 261120  }
  0x21   : > { %s212_s25 = scalar_lea.hbm %s642_s2, %s323_s18  ;;  %s214_s27 = sshll.u32 %s190_s26, 4  ;;  %v196_v1 = vld [vmem:[%s641_s1] sm:$0xff]  ;;  %s215_s27 = int_to_ptr.vmem [resolvable:$true] %s214_s27 }
  0x22   : > { %s216_s28 = sshll.u32 %s212_s25, 4  ;;  %v197_v2 = vadd.f32 %v196_v1, %v195_v0  ;;  %s201_s21 = scalar_lea.sflag [#allocation4], %s591_s7  ;;  %s217_s28 = int_to_ptr.hbm [resolvable:$true] %s216_s28 }
  0x23   : > { %s432_s12 = sshra.s32 %s217_s28, 4  ;;  %s438_s6 = scalar_lea.hbm %s642_s2, 16  ;;  %s433_s12 = int_to_ptr.hbm [resolvable:$true] %s432_s12 }
  0x24   : > { %199 = vst.msk [vmem:[%s190_s26] sm:$0xff] %vm198_vm0, %v197_v2  ;;  %s434_s3 = scalar_lea.hbm %s433_s12, 8  ;;  %p439_p7 = scmp.lt.s32.totalorder %s433_s12, %s642_s2 }
  0x25   : > { %p435_p4 = scmp.ne.s32.totalorder %s433_s12, %s434_s3  ;;  %p440_p8 = scmp.lt.s32.totalorder %s438_s6, %s434_s3 }
  0x27   : > { %p436_p5 = pnand %p435_p4, %p568_p9  ;;  %p441_p10 = por %p440_p8, %p439_p7 }
  0x29   : > { %p437_p6 = pneg %p436_p5 }
  0x2b   : > { %p442_p13 = pnand %p441_p10, %p437_p6 }
  0x2d   : > { %445 = shalt.err (!%p442_p13)
}
  0x2e   : > { %328 = dma.vmem_to_hbm [thread:$0]  (%p568_p9), %s215_s27, 128, %s217_s28, %s201_s21  }
  0x2f PF: > { %s228_s7 = sand.u32 1, %s480_s9   ;;  %p335_p0 = pnand %p316_p12, %p575_p11 }
  0x30   : > { %s229_s16 = scalar_lea.sflag [#allocation4], %s228_s7 }
  0x31   : > { %p336_p1 = pneg %p335_p0 }
  0x33   : > { %475 = dma.done.wait (%p336_p1), %s229_s16, 128  }
  0x34   : > { %477 = vsyncadd (%p336_p1), %s229_s16, 4294967168  ;;  %s18_s14 = sadd.s32 1, %s500_s14   ;;  %s647_s9 = smov %s484_s10 }
  0x35   : > { %p15_p2 = scmp.ge.s32.totalorder %s18_s14, 4   ;;  %s648_s10 = smov %s488_s11 }
  0x36   : > { %s649_s11 = smov %s573_s23  ;;  %s650_s12 = smov %s496_s13 }
  0x37   : > { %s651_s13 = smov %s653_s17  ;;  %17 = sbr.rel (!%p15_p2) target bundleno = 6 (0x6), region = 76 }
  0x3c   :  { %235 = vsyncpa [#allocation3], 1 }
  0x3d   :  { %237 = vsyncpa [#allocation3 + $0x1], 1 }
  0x3e   :  { %238 = vsyncpa [#allocation4], 1 }
  0x3f   :  { %240 = vsyncpa [#allocation4 + $0x1], 1 }

</bundles_post_ra>
